<compile_context>
chip_gen: v7x
topology: tpu7x:2x2x1
jax: 0.10.0
libtpu: 0.0.40
codegen_flags: <defaults>
</compile_context>

<pallas_src>
import jax
import jax.numpy as jnp
from jax.experimental import pallas as pl
from jax.experimental.pallas import tpu as pltpu


def _score_kernel(x_ref, w_ref, b_ref, o_ref):
    # x_ref: (TB, H) last-token embeddings, encoder dtype (bf16/f32), VMEM
    # w_ref: (H, 1)  score-layer weight column, same dtype as x, VMEM
    # b_ref: (1,)    score-layer bias scalar, f32, SMEM
    # o_ref: (TB, 1) reward logits, f32, VMEM
    # K-reduction rides the MXU (extended slot, otherwise idle here); f32
    # accumulate.  HIGHEST keeps the f32 x f32 path full-precision (multi-pass)
    # so the tight f32 reference comparison holds.
    o_ref[...] = (
        jnp.dot(
            x_ref[...],
            w_ref[...],
            precision=jax.lax.Precision.HIGHEST,
            preferred_element_type=jnp.float32,
        )
        + b_ref[0]
    )


def _pick_batch_tile(B, block_b):
    """Batch tile: big tiles for HBM roofline, >=2 even steps for v7x's 2 TCs."""
    if B > block_b:
        return block_b
    # Whole batch fits in one tile: split into two even, 8-row-aligned tiles so
    # the "parallel" grid axis has 2 steps (v7x dual TensorCore).  Otherwise a
    # single tile equal to the full batch dim (always a legal block).
    if B >= 16 and B % 16 == 0:
        return B // 2
    return B


def reward_predictor_score(hidden_states, weight, bias, *, block_b=1024):
    """hidden_states: (B, S, H) encoder output (bf16/f32); weight: (1, H); bias: (1,).

    Returns (B, 1) f32 reward logits, matching nn.Linear(hdim, 1) applied to the
    last-token encoder hidden state.
    """
    B, S, H = hidden_states.shape
    x_dtype = hidden_states.dtype
    itemsize = jnp.dtype(x_dtype).itemsize

    # torch Linear stores the weight as (1, H); the MXU wants the (H, 1) column.
    # Keep f32 weights in f32 when x is f32 (tight numerics); match bf16 x.
    w_col = weight.reshape(H, 1).astype(x_dtype)
    b_scalar = bias.reshape(1).astype(jnp.float32)

    tb = _pick_batch_tile(B, block_b)
    grid = (pl.cdiv(B, tb),)

    if H % 128 == 0:
        # Fold the last-token slice into the BlockSpec: (B, S, H) -> (B, S*H) is
        # a layout-preserving bitcast (no copy kernel / extra dispatch); block
        # column S-1 of width H is exactly the last token, DMA'd straight from
        # HBM (only B*H elements ever move).
        x_in = hidden_states.reshape(B, S * H)
        x_spec = pl.BlockSpec((tb, H), lambda i: (i, S - 1))
    else:
        # Lane-unaligned H: slice in the wrapper (block then equals full (., H)).
        x_in = hidden_states[:, -1, :]
        x_spec = pl.BlockSpec((tb, H), lambda i: (i, 0))

    # Double-buffered x tile is the dominant VMEM consumer; leave headroom but
    # stay under v7x's 64 MiB physical VMEM.
    x_tile_bytes = tb * H * itemsize
    vmem_limit = int(min(64 * 1024 * 1024, max(32 * 1024 * 1024, 4 * x_tile_bytes)))

    cost = pl.CostEstimate(
        flops=2 * B * H,
        transcendentals=0,
        bytes_accessed=B * H * itemsize + H * itemsize + B * 4,
    )

    return pl.pallas_call(
        _score_kernel,
        out_shape=jax.ShapeDtypeStruct((B, 1), jnp.float32),
        grid=grid,
        in_specs=[
            x_spec,                                               # x tile
            pl.BlockSpec((H, 1), lambda i: (0, 0)),               # weight column
            pl.BlockSpec(memory_space=pltpu.MemorySpace.SMEM),    # bias scalar
        ],
        out_specs=pl.BlockSpec((tb, 1), lambda i: (i, 0)),
        compiler_params=pltpu.CompilerParams(
            dimension_semantics=("parallel",),
            vmem_limit_bytes=vmem_limit,
        ),
        cost_estimate=cost,
    )(x_in, w_col, b_scalar)


if __name__ == "__main__":
    key = jax.random.PRNGKey(0)
    kx, kw, kb, kx2 = jax.random.split(key, 4)

    # Small shapes consistent with the forward pass: batch=2, seq=8, hidden=128
    # (lane-aligned like T5's hdim=768, so the fused last-token-slice path runs).
    B, S, H = 2, 8, 128
    x = jax.random.normal(kx, (B, S, H), dtype=jnp.float32)

    # nn.Linear(hdim, 1) parameters.  NOTE: the module's __init__ zero-fills
    # these (weight.fill_(0), bias.fill_(0)); small nonzero values are used so
    # the correctness check is non-trivial.
    w = jax.random.normal(kw, (1, H), dtype=jnp.float32) * 0.02
    b = jax.random.normal(kb, (1,), dtype=jnp.float32) * 0.02

    # f32 path (MXU f32 matmul, HIGHEST precision), tight tolerance.
    out = jax.block_until_ready(reward_predictor_score(x, w, b))
    ref = x[:, -1, :] @ w.T + b
    assert out.shape == (B, 1), out.shape
    assert jnp.allclose(out, ref, atol=1e-4, rtol=1e-4), (out, ref)

    # bf16 encoder-dtype path (weight cast to bf16, MXU bf16 matmul, f32 acc).
    x_bf16 = x.astype(jnp.bfloat16)
    out_bf16 = jax.block_until_ready(reward_predictor_score(x_bf16, w, b))
    ref_bf16 = (
        x_bf16.astype(jnp.float32)[:, -1, :]
        @ w.astype(jnp.bfloat16).astype(jnp.float32).T
        + b
    )
    assert out_bf16.dtype == jnp.float32
    assert jnp.allclose(out_bf16, ref_bf16, atol=1e-3, rtol=1e-3), (out_bf16, ref_bf16)

    # Lane-unaligned hidden size exercises the wrapper-slice fallback path.
    Hs = 32
    xs = jax.random.normal(kx2, (B, S, Hs), dtype=jnp.float32)
    ws = w[:, :Hs]
    out_s = jax.block_until_ready(reward_predictor_score(xs, ws, b))
    ref_s = xs[:, -1, :] @ ws.T + b
    assert jnp.allclose(out_s, ref_s, atol=1e-4, rtol=1e-4), (out_s, ref_s)

    # Multi-tile grid (B=16 -> two 8-row tiles: the v7x dual-TC split path).
    Bm = 16
    xm = jax.random.normal(kx2, (Bm, S, H), dtype=jnp.float32)
    out_m = jax.block_until_ready(reward_predictor_score(xm, w, b))
    ref_m = xm[:, -1, :] @ w.T + b
    assert out_m.shape == (Bm, 1), out_m.shape
    assert jnp.allclose(out_m, ref_m, atol=1e-4, rtol=1e-4), (out_m, ref_m)

    # Module's default (zero-initialized head) semantics.
    zero_out = jax.block_until_ready(
        reward_predictor_score(
            x, jnp.zeros((1, H), jnp.float32), jnp.zeros((1,), jnp.float32)
        )
    )
    assert jnp.allclose(zero_out, 0.0), zero_out

    print("KERNEL_OK")
</pallas_src>

<mosaic_0001>
module attributes {stable_mosaic.version = 11 : i64} {
  func.func @_score_kernel(%arg0: i32, %arg1: memref<2x128xf32, #tpu.memory_space<vmem>>, %arg2: memref<128x1xf32, #tpu.memory_space<vmem>>, %arg3: memref<1xf32, #tpu.memory_space<smem>>, %arg4: memref<2x1xf32, #tpu.memory_space<vmem>>) attributes {dimension_semantics = [#tpu.dimension_semantics<parallel>], iteration_bounds = array<i64: 1>, scalar_prefetch = 0 : i64, scratch_operands = 0 : i64, tpu.core_type = #tpu.core_type<tc>, window_params = [{transform_indices = @transform_0, window_bounds = array<i64: 2, 128>}, {pipeline_mode = #tpu.pipeline_mode<synchronous>, transform_indices = @transform_1, window_bounds = array<i64: 128, 1>}, {transform_indices = @transform_2, window_bounds = array<i64: 1>}, {transform_indices = @transform_3, window_bounds = array<i64: 2, 1>}]} {
    %c0 = arith.constant 0 : index
    %c0_0 = arith.constant 0 : index
    %0 = vector.load %arg1[%c0, %c0_0] : memref<2x128xf32, #tpu.memory_space<vmem>>, vector<2x128xf32>
    %c0_1 = arith.constant 0 : index
    %c0_2 = arith.constant 0 : index
    %1 = vector.load %arg2[%c0_1, %c0_2] : memref<128x1xf32, #tpu.memory_space<vmem>>, vector<128x1xf32>
    %cst = arith.constant dense<0.000000e+00> : vector<2x1xf32>
    %2 = tpu.matmul %0, %1, %cst {dimension_numbers = #tpu.dot_dimension_numbers<[1], [0], [0], [1], [0, 0, 1, 1], [], []>, precision = #tpu.contract_precision<fp32>} : vector<2x128xf32>, vector<128x1xf32>, vector<2x1xf32> -> vector<2x1xf32>
    %c0_3 = arith.constant 0 : index
    %3 = memref.load %arg3[%c0_3] : memref<1xf32, #tpu.memory_space<smem>>
    %4 = vector.broadcast %3 : f32 to vector<2x1xf32>
    %5 = arith.addf %2, %4 : vector<2x1xf32>
    %c0_4 = arith.constant 0 : index
    %c0_5 = arith.constant 0 : index
    %6 = vector.load %arg4[%c0_4, %c0_5] : memref<2x1xf32, #tpu.memory_space<vmem>>, vector<2x1xf32>
    tpu.vector_store %arg4[%c0_4, %c0_5], %5 {strides = array<i32>} : memref<2x1xf32, #tpu.memory_space<vmem>>, vector<2x1xf32>,
    return
  }
  func.func @transform_0(%arg0: i32) -> (i32, i32) {
    %c7_i32 = arith.constant 7 : i32
    %c0_i32 = arith.constant 0 : i32
    return %arg0, %c7_i32 : i32, i32
  }
  func.func @transform_1(%arg0: i32) -> (i32, i32) {
    %c0_i32 = arith.constant 0 : i32
    %c0_i32_0 = arith.constant 0 : i32
    %c0_i32_1 = arith.constant 0 : i32
    return %c0_i32, %c0_i32_0 : i32, i32
  }
  func.func @transform_2(%arg0: i32) -> i32 {
    %c0_i32 = arith.constant 0 : i32
    %c0_i32_0 = arith.constant 0 : i32
    return %c0_i32 : i32
  }
  func.func @transform_3(%arg0: i32) -> (i32, i32) {
    %c0_i32 = arith.constant 0 : i32
    %c0_i32_0 = arith.constant 0 : i32
    return %arg0, %c0_i32 : i32, i32
  }
}

</mosaic_0001>

<bundles_post_ra>
// kernel: tpu_custom_call.1
= control target key start
LH: loop header
LB: loop body
LE: loop exit
PB: predicated region body
PF: predicated region fallthrough
CT: control target
= control target key end

     0   :  { %v1154_v0 = vmov 0.0|0.0   ;;  %vm1155_vm0 = vmmov 0   ;;  %v1156_v8 = vmov 0.0   ;;  %vm678_vm1 = vcmask 1024   ;;  %s1481_s1 = inlined_call_operand.vmem [shape: f32[128,1], index: 1, kind: input, shape index: {}]   ;;  %s1482_s0 = inlined_call_operand.vmem [shape: f32[2,1024], index: 0, kind: input, shape index: {}]   ;;  %s1483_s2 = inlined_call_operand.<no memory space> [shape: f32[1], index: 2, kind: input, shape index: {}]   ;;  %s1484_s3 = inlined_call_operand.vmem [shape: f32[2,1], index: 3, kind: output, shape index: {}]  }
   0x1   :  { %997 = vmatprep.subr.bf16.mxu1 %v1154_v0  ;;  %1069 = vmatprep.subr.bf16.mxu0 %v1154_v0  ;;  %v19_v1 = vld [vmem:[%s1481_s1] sm:$0xff]  ;;  %v20_v2 = vld [vmem:[%s1481_s1 + $0x8] sm:$0xff]  ;;  %v21_v3 = vld [vmem:[%s1481_s1 + $0x10] sm:$0xff] }
   0x2   :  { %v38_v4 = vand.u32 4294901760, %v19_v1  ;;  %v41_v5 = vand.u32 4294901760, %v20_v2  ;;  %v22_v6 = vld [vmem:[%s1481_s1 + $0x18] sm:$0xff]  ;;  %v44_v7 = vand.u32 4294901760, %v21_v3  ;;  %819 = vmatprep.mubr.msk.f32.mxu1 %vm1155_vm0, %v1156_v8  ;;  %924 = vmatprep.mubr.msk.f32.mxu0 %vm1155_vm0, %v1156_v8  ;;  %v23_v10 = vld [vmem:[%s1481_s1 + $0x20] sm:$0xff]  ;;  %v24_v11 = vld [vmem:[%s1481_s1 + $0x28] sm:$0xff] }
   0x3   :  { %v47_v9 = vand.u32 4294901760, %v22_v6  ;;  %v50_v14 = vand.u32 4294901760, %v23_v10  ;;  %v53_v15 = vand.u32 4294901760, %v24_v11  ;;  %v25_v16 = vld [vmem:[%s1481_s1 + $0x30] sm:$0xff]  ;;  %v26_v17 = vld [vmem:[%s1481_s1 + $0x38] sm:$0xff]  ;;  %v1224_v21 = vld [vmem:[%s1481_s1 + $0x40] sm:$0xff] }
   0x4   :  { %v1201_v12 = vpack.c.bf16 %v41_v5, %v38_v4  ;;  %v56_v19 = vand.u32 4294901760, %v25_v16  ;;  %v59_v20 = vand.u32 4294901760, %v26_v17  ;;  %v1229_v22 = vld [vmem:[%s1481_s1 + $0x48] sm:$0xff]  ;;  %v62_v24 = vand.u32 4294901760, %v1224_v21  ;;  %v1245_v27 = vld [vmem:[%s1481_s1 + $0x50] sm:$0xff]  ;;  %v1250_v28 = vld [vmem:[%s1481_s1 + $0x58] sm:$0xff] }
   0x5   :  { %v1205_v13 = vpack.c.bf16 %v47_v9, %v44_v7  ;;  %v1217_v18 = vpack.c.bf16 %v53_v15, %v50_v14  ;;  %v65_v25 = vand.u32 4294901760, %v1229_v22  ;;  %v684_v26 = vld [vmem:[%s1482_s0 + $0xe] sm:$0x3]  ;;  %v1252_v29 = vsub.f32 %v19_v1, %v38_v4  ;;  %v1267_v35 = vld [vmem:[%s1481_s1 + $0x60] sm:$0xff]  ;;  %v1296_v43 = vld [vmem:[%s1481_s1 + $0x70] sm:$0xff] }
   0x6   :  { %999 = vmatpush3.bf16.msra.mxu1 %v1201_v12  ;;  %1071 = vmatpush3.bf16.msra.mxu0 %v1201_v12  ;;  %v1233_v23 = vpack.c.bf16 %v59_v20, %v56_v19  ;;  %v1254_v30 = vand.u32 4294901760, %v684_v26  ;;  %v1256_v31 = vsub.f32 %v20_v2, %v41_v5  ;;  %v68_v33 = vand.u32 4294901760, %v1245_v27  ;;  %v1274_v36 = vld [vmem:[%s1481_s1 + $0x68] sm:$0xff]  ;;  %v1301_v44 = vld [vmem:[%s1481_s1 + $0x78] sm:$0xff] }
   0x7   :  { %1000 = vmatprep.subr.bf16.mxu1 %v1154_v0  ;;  %1072 = vmatprep.subr.bf16.mxu0 %v1154_v0  ;;  %v1260_v32 = vpack.c.bf16 %v65_v25, %v62_v24  ;;  %v71_v34 = vand.u32 4294901760, %v1250_v28  ;;  %v1276_v37 = vsub.f32 %v21_v3, %v44_v7  ;;  %v1278_v38 = vsub.f32 %v22_v6, %v47_v9 }
   0x8   :  { %v74_v39 = vand.u32 4294901760, %v1267_v35  ;;  %v1282_v40 = vsub.f32 %v684_v26, %v1254_v30  ;;  %v77_v42 = vand.u32 4294901760, %v1274_v36  ;;  %v131_v45 = vand.u32 4294901760, %v1252_v29 }
   0x9   :  { %v1290_v41 = vpack.c.bf16 %v71_v34, %v68_v33  ;;  %v138_v46 = vand.u32 4294901760, %v1256_v31  ;;  %v1307_v47 = vsub.f32 %v23_v10, %v50_v14  ;;  %v1309_v48 = vsub.f32 %v24_v11, %v53_v15 }
   0xa   :  { %1002 = vmatpush3.bf16.msra.mxu1 %v1205_v13  ;;  %1074 = vmatpush3.bf16.msra.mxu0 %v1205_v13  ;;  %v80_v49 = vand.u32 4294901760, %v1296_v43  ;;  %v83_v50 = vand.u32 4294901760, %v1301_v44  ;;  %v120_v51 = vand.u32 4294901760, %v1282_v40  ;;  %v145_v52 = vand.u32 4294901760, %v1276_v37 }
   0xb   :  { %1003 = vmatprep.subr.bf16.mxu1 %v1154_v0  ;;  %1075 = vmatprep.subr.bf16.mxu0 %v1154_v0  ;;  %v1321_v53 = vpack.c.bf16 %v77_v42, %v74_v39  ;;  %v132_v54 = vsub.f32 %v1252_v29, %v131_v45  ;;  %v139_v55 = vsub.f32 %v1256_v31, %v138_v46  ;;  %v152_v56 = vand.u32 4294901760, %v1278_v38 }
   0xc   :  { %v1328_v57 = vsub.f32 %v25_v16, %v56_v19  ;;  %v1330_v58 = vsub.f32 %v26_v17, %v59_v20  ;;  %v121_v59 = vsub.f32 %v1282_v40, %v120_v51  ;;  %v146_v60 = vsub.f32 %v1276_v37, %v145_v52 }
   0xd   :  { %v159_v61 = vand.u32 4294901760, %v1307_v47  ;;  %v166_v62 = vand.u32 4294901760, %v1309_v48  ;;  %v1342_v63 = vpack.c.bf16 %v83_v50, %v80_v49  ;;  %v133_v1 = vand.u32 4294901760, %v132_v54 }
   0xe   :  { %1005 = vmatpush3.bf16.msra.mxu1 %v1217_v18  ;;  %1077 = vmatpush3.bf16.msra.mxu0 %v1217_v18  ;;  %v140_v2 = vand.u32 4294901760, %v139_v55  ;;  %v153_v3 = vsub.f32 %v1278_v38, %v152_v56  ;;  %v1348_v4 = vsub.f32 %v1224_v21, %v62_v24  ;;  %v1351_v5 = vsub.f32 %v1229_v22, %v65_v25 }
   0xf   :  { %1006 = vmatprep.subr.bf16.mxu1 %v1154_v0  ;;  %1078 = vmatprep.subr.bf16.mxu0 %v1154_v0  ;;  %v1094_v6 = vpack.c.bf16 %v138_v46, %v131_v45  ;;  %v122_v7 = vand.u32 4294901760, %v121_v59  ;;  %v147_v9 = vand.u32 4294901760, %v146_v60  ;;  %v160_v10 = vsub.f32 %v1307_v47, %v159_v61 }
  0x10   :  { %v167_v11 = vsub.f32 %v1309_v48, %v166_v62  ;;  %v1022_v14 = vpack.c.bf16 %v140_v2, %v133_v1  ;;  %v154_v15 = vand.u32 4294901760, %v153_v3  ;;  %v173_v16 = vand.u32 4294901760, %v1328_v57 }
  0x11   :  { %v180_v17 = vand.u32 4294901760, %v1330_v58  ;;  %v1364_v19 = vsub.f32 %v1245_v27, %v68_v33  ;;  %v1369_v20 = vsub.f32 %v1250_v28, %v71_v34  ;;  %v1097_v21 = vpack.c.bf16 %v152_v56, %v145_v52 }
  0x12   :  { %1008 = vmatpush3.bf16.msra.mxu1 %v1233_v23  ;;  %1080 = vmatpush3.bf16.msra.mxu0 %v1233_v23  ;;  %v161_v22 = vand.u32 4294901760, %v160_v10  ;;  %v168_v24 = vand.u32 4294901760, %v167_v11  ;;  %v187_v25 = vand.u32 4294901760, %v1348_v4  ;;  %v1025_v26 = vpack.c.bf16 %v154_v15, %v147_v9 }
  0x13   :  { %1009 = vmatprep.subr.bf16.mxu1 %v1154_v0  ;;  %1081 = vmatprep.subr.bf16.mxu0 %v1154_v0  ;;  %v174_v45 = vsub.f32 %v1328_v57, %v173_v16  ;;  %v181_v27 = vsub.f32 %v1330_v58, %v180_v17  ;;  %v194_v33 = vand.u32 4294901760, %v1351_v5  ;;  %v1380_v28 = vsub.f32 %v1267_v35, %v74_v39 }
  0x14   :  { %v1385_v34 = vsub.f32 %v1274_v36, %v77_v42  ;;  %v1028_v46 = vpack.c.bf16 %v168_v24, %v161_v22  ;;  %v188_v52 = vsub.f32 %v1348_v4, %v187_v25  ;;  %v201_v54 = vand.u32 4294901760, %v1364_v19 }
  0x15   :  { %v175_v35 = vand.u32 4294901760, %v174_v45  ;;  %v182_v39 = vand.u32 4294901760, %v181_v27  ;;  %v195_v55 = vsub.f32 %v1351_v5, %v194_v33  ;;  %v208_v36 = vand.u32 4294901760, %v1369_v20 }
  0x16   :  { %1011 = vmatpush3.bf16.msra.mxu1 %v1260_v32  ;;  %1083 = vmatpush3.bf16.msra.mxu0 %v1260_v32  ;;  %v1400_v42 = vsub.f32 %v1296_v43, %v80_v49  ;;  %v1405_v56 = vsub.f32 %v1301_v44, %v83_v50  ;;  %v1103_v59 = vpack.c.bf16 %v180_v17, %v173_v16  ;;  %v189_v60 = vand.u32 4294901760, %v188_v52 }
  0x17   :  { %1012 = vmatprep.subr.bf16.mxu1 %v1154_v0  ;;  %1084 = vmatprep.subr.bf16.mxu0 %v1154_v0  ;;  %v1031_v1 = vpack.c.bf16 %v182_v39, %v175_v35  ;;  %v196_v2 = vand.u32 4294901760, %v195_v55  ;;  %v209_v3 = vsub.f32 %v1369_v20, %v208_v36  ;;  %v222_v43 = vand.u32 4294901760, %v1385_v34 }
  0x18   :  { %v1106_v44 = vpack.c.bf16 %v194_v33, %v187_v25  ;;  %v236_v11 = vand.u32 4294901760, %v1405_v56 }
  0x19   :  { %v210_v9 = vand.u32 4294901760, %v209_v3  ;;  %v223_v10 = vsub.f32 %v1385_v34, %v222_v43 }
  0x1a   :  { %1014 = vmatpush3.bf16.msra.mxu1 %v1290_v41  ;;  %1086 = vmatpush3.bf16.msra.mxu0 %v1290_v41  ;;  %v237_v22 = vsub.f32 %v1405_v56, %v236_v11 }
  0x1b   :  { %1015 = vmatprep.subr.bf16.mxu1 %v1154_v0  ;;  %1087 = vmatprep.subr.bf16.mxu0 %v1154_v0  ;;  %v224_v17 = vand.u32 4294901760, %v223_v10 }
  0x1c   :  { %v238_v45 = vand.u32 4294901760, %v237_v22 }
  0x1e   :  { %1017 = vmatpush3.bf16.msra.mxu1 %v1321_v53  ;;  %1089 = vmatpush3.bf16.msra.mxu0 %v1321_v53 }
  0x1f   :  { %1018 = vmatprep.subr.bf16.mxu1 %v1154_v0  ;;  %1090 = vmatprep.subr.bf16.mxu0 %v1154_v0 }
  0x22   :  { %1020 = vmatpush3.bf16.msra.mxu1 %v1342_v63  ;;  %1092 = vmatpush3.bf16.msra.mxu0 %v1342_v63 }
  0x23   :  { %1021 = vmatprep.subr.bf16.mxu1 %v1154_v0  ;;  %1093 = vmatprep.subr.bf16.mxu0 %v1154_v0 }
  0x25   :  { %820 = vmatmul.mubr.f32.vlgmr.msra.gmra.mrb[0].mxu1 %v122_v7  ;;  %925 = vmatmul.mubr.f32.vlgmr.msra.gmra.mrb[0].mxu0 %v120_v51  ;;  %v1100_v51 = vpack.c.bf16 %v166_v62, %v159_v61  ;;  %v202_v61 = vsub.f32 %v1364_v19, %v201_v54  ;;  %v215_v62 = vand.u32 4294901760, %v1380_v28  ;;  %v1034_v7 = vpack.c.bf16 %v196_v2, %v189_v60 }
  0x26   :  { %1023 = vmatpush3.bf16.msra.mxu1 %v1022_v14  ;;  %1095 = vmatpush3.bf16.msra.mxu0 %v1094_v6  ;;  %v229_v6 = vand.u32 4294901760, %v1400_v42  ;;  %v1109_v14 = vpack.c.bf16 %v208_v36, %v201_v54 }
  0x27   :  { %1024 = vmatprep.subr.bf16.mxu1 %v1154_v0  ;;  %1096 = vmatprep.subr.bf16.mxu0 %v1154_v0  ;;  %v203_v49 = vand.u32 4294901760, %v202_v61  ;;  %v216_v50 = vsub.f32 %v1380_v28, %v215_v62  ;;  %v1112_v25 = vpack.c.bf16 %v222_v43, %v215_v62 }
  0x28   :  { %854 = vmatprep.mubr.msk.f32.mxu1 %vm1155_vm0, %v1156_v8  ;;  %959 = vmatprep.mubr.msk.f32.mxu0 %vm1155_vm0, %v1156_v8  ;;  %v1115_v33 = vpack.c.bf16 %v236_v11, %v229_v6 }
  0x29   :  { %v217_v15 = vand.u32 4294901760, %v216_v50  ;;  %v1037_v16 = vpack.c.bf16 %v210_v9, %v203_v49 }
  0x2a   :  { %1026 = vmatpush3.bf16.msra.mxu1 %v1025_v26  ;;  %1098 = vmatpush3.bf16.msra.mxu0 %v1097_v21  ;;  %v230_v21 = vsub.f32 %v1400_v42, %v229_v6 }
  0x2b   :  { %1027 = vmatprep.subr.bf16.mxu1 %v1154_v0  ;;  %1099 = vmatprep.subr.bf16.mxu0 %v1154_v0  ;;  %v1040_v24 = vpack.c.bf16 %v224_v17, %v217_v15 }
  0x2c   :  { %v231_v26 = vand.u32 4294901760, %v230_v21 }
  0x2e   :  { %1029 = vmatpush3.bf16.msra.mxu1 %v1028_v46  ;;  %1101 = vmatpush3.bf16.msra.mxu0 %v1100_v51  ;;  %v1043_v27 = vpack.c.bf16 %v238_v45, %v231_v26  ;;  %v1046_v46 = vpack.c.bf16 %v1256_v31, %v1252_v29  ;;  %v1049_v51 = vpack.c.bf16 %v1278_v38, %v1276_v37  ;;  %v36_v31 = vstv %s1483_s2 }
  0x2f   :  { %1030 = vmatprep.subr.bf16.mxu1 %v1154_v0  ;;  %1102 = vmatprep.subr.bf16.mxu0 %v1154_v0  ;;  %v1052_v29 = vpack.c.bf16 %v1309_v48, %v1307_v47 }
  0x32   :  { %1032 = vmatpush3.bf16.msra.mxu1 %v1031_v1  ;;  %1104 = vmatpush3.bf16.msra.mxu0 %v1103_v59 }
  0x33   :  { %1033 = vmatprep.subr.bf16.mxu1 %v1154_v0  ;;  %1105 = vmatprep.subr.bf16.mxu0 %v1154_v0 }
  0x36   :  { %1035 = vmatpush3.bf16.msra.mxu1 %v1034_v7  ;;  %1107 = vmatpush3.bf16.msra.mxu0 %v1106_v44 }
  0x37   :  { %1036 = vmatprep.subr.bf16.mxu1 %v1154_v0  ;;  %1108 = vmatprep.subr.bf16.mxu0 %v1154_v0 }
  0x3a   :  { %1038 = vmatpush3.bf16.msra.mxu1 %v1037_v16  ;;  %1110 = vmatpush3.bf16.msra.mxu0 %v1109_v14 }
  0x3b   :  { %1039 = vmatprep.subr.bf16.mxu1 %v1154_v0  ;;  %1111 = vmatprep.subr.bf16.mxu0 %v1154_v0 }
  0x3e   :  { %1041 = vmatpush3.bf16.msra.mxu1 %v1040_v24  ;;  %1113 = vmatpush3.bf16.msra.mxu0 %v1112_v25 }
  0x3f   :  { %1042 = vmatprep.subr.bf16.mxu1 %v1154_v0  ;;  %1114 = vmatprep.subr.bf16.mxu0 %v1154_v0 }
  0x42   :  { %1044 = vmatpush3.bf16.msra.mxu1 %v1043_v27  ;;  %1116 = vmatpush3.bf16.msra.mxu0 %v1115_v33 }
  0x43   :  { %1045 = vmatprep.subr.bf16.mxu1 %v1154_v0  ;;  %1117 = vmatprep.subr.bf16.mxu0 %v1154_v0 }
  0x45   :  { %855 = vmatmul.mubr.f32.vlgmr.msra.gmra.mrb[0].mxu1 %v1254_v30  ;;  %960 = vmatmul.mubr.f32.vlgmr.msra.gmra.mrb[0].mxu0 %v1254_v30 }
  0x46   :  { %1047 = vmatpush3.bf16.msra.mxu1 %v1046_v46  ;;  %1119 = vmatpush3.bf16.msra.mxu0 %v1201_v12  ;;  %v1055_v12 = vpack.c.bf16 %v1330_v58, %v1328_v57 }
  0x47   :  { %1048 = vmatprep.subr.bf16.mxu1 %v1154_v0  ;;  %1120 = vmatprep.subr.bf16.mxu0 %v1154_v0 }
  0x48   :  { %889 = vmatprep.mubr.msk.f32.mxu1 %vm1155_vm0, %v1156_v8  ;;  %994 = vmatprep.mubr.msk.f32.mxu0 %vm1155_vm0, %v1156_v8  ;;  %v1058_v8 = vpack.c.bf16 %v1351_v5, %v1348_v4 }
  0x4a   :  { %1050 = vmatpush3.bf16.msra.mxu1 %v1049_v51  ;;  %1122 = vmatpush3.bf16.msra.mxu0 %v1205_v13  ;;  %v1061_v13 = vpack.c.bf16 %v1369_v20, %v1364_v19 }
  0x4b   :  { %1051 = vmatprep.subr.bf16.mxu1 %v1154_v0  ;;  %1123 = vmatprep.subr.bf16.mxu0 %v1154_v0 }
  0x4e   :  { %1053 = vmatpush3.bf16.msra.mxu1 %v1052_v29  ;;  %1125 = vmatpush3.bf16.msra.mxu0 %v1217_v18  ;;  %v1064_v18 = vpack.c.bf16 %v1385_v34, %v1380_v28 }
  0x4f   :  { %1054 = vmatprep.subr.bf16.mxu1 %v1154_v0  ;;  %1126 = vmatprep.subr.bf16.mxu0 %v1154_v0 }
  0x52   :  { %1056 = vmatpush3.bf16.msra.mxu1 %v1055_v12  ;;  %1128 = vmatpush3.bf16.msra.mxu0 %v1233_v23  ;;  %v1067_v23 = vpack.c.bf16 %v1405_v56, %v1400_v42 }
  0x53   :  { %1057 = vmatprep.subr.bf16.mxu1 %v1154_v0  ;;  %1129 = vmatprep.subr.bf16.mxu0 %v1154_v0 }
  0x56   :  { %1059 = vmatpush3.bf16.msra.mxu1 %v1058_v8  ;;  %1131 = vmatpush3.bf16.msra.mxu0 %v1260_v32 }
  0x57   :  { %1060 = vmatprep.subr.bf16.mxu1 %v1154_v0  ;;  %1132 = vmatprep.subr.bf16.mxu0 %v1154_v0 }
  0x5a   :  { %1062 = vmatpush3.bf16.msra.mxu1 %v1061_v13  ;;  %1134 = vmatpush3.bf16.msra.mxu0 %v1290_v41 }
  0x5b   :  { %1063 = vmatprep.subr.bf16.mxu1 %v1154_v0  ;;  %1135 = vmatprep.subr.bf16.mxu0 %v1154_v0 }
  0x5e   :  { %1065 = vmatpush3.bf16.msra.mxu1 %v1064_v18  ;;  %1137 = vmatpush3.bf16.msra.mxu0 %v1321_v53 }
  0x5f   :  { %1066 = vmatprep.subr.bf16.mxu1 %v1154_v0  ;;  %1138 = vmatprep.subr.bf16.mxu0 %v1154_v0 }
  0x62   :  { %1068 = vmatpush3.bf16.msra.mxu1 %v1067_v23  ;;  %1140 = vmatpush3.bf16.msra.mxu0 %v1342_v63 }
  0x65   :  { %890 = vmatmul.mubr.f32.vlgmr.msra.gmra.mrb[0].mxu1 %v1282_v40  ;;  %995 = vmatmul.mubr.f32.vlgmr.msra.gmra.mrb[0].mxu0 %v1254_v30 }
 0x138   :  { %v379_v32 = vpop.f32.mrb[0].mxu1  ;;  %v674_v37 = vpop.f32.mrb[0].mxu0 }
 0x139   :  { %v1141_v38 = vadd.f32 %v379_v32, %v36_v31  ;;  %v891_v41 = vpop.f32.mrb[1].mxu1  ;;  %v996_v47 = vpop.f32.mrb[1].mxu0 }
 0x13b   :  { %v1142_v48 = vadd.f32 %v1141_v38, %v674_v37 }
 0x13d   :  { %679 = vst.msk [vmem:[%s1484_s3] sm:$0x3] %vm678_vm1, %v1142_v48 }

</bundles_post_ra>
